<compile_context>
chip_gen: v7x
topology: tpu7x:2x2x1
jax: 0.10.0
libtpu: 0.0.40
codegen_flags: <defaults>
</compile_context>

<pallas_src>
import functools

import jax
import jax.numpy as jnp
from jax.experimental import pallas as pl
from jax.experimental.pallas import tpu as pltpu

_LANES = 128                 # lane width of a vreg
_SMALL_N = 64 * 1024         # elements; below this skip the lane-dense repack
_TILE_BYTES_BIG = 4 << 20    # per-block byte budget on v6e / v7x
_TILE_BYTES_V5E = 2 << 20    # per-block byte budget on v5e (16 MiB scoped VMEM)


def _plus_one_kernel(x_ref, o_ref):
    # message = x + 1 (dtype-preserving, like torch; literal 1 is weak-typed)
    o_ref[...] = x_ref[...] + 1


def _sublane_multiple(dtype) -> int:
    # 32-bit -> 8 sublanes, 16-bit -> 16, 8-bit -> 32 (packed dtypes stack on sublanes).
    return max(8, 32 // jnp.dtype(dtype).itemsize)


@functools.lru_cache(maxsize=1)
def _chip_kind() -> str:
    try:
        return jax.devices()[0].device_kind.lower()
    except Exception:
        return ""


def _tile_budget_bytes() -> int:
    kind = _chip_kind()
    if "v5e" in kind or "v5 lite" in kind or "v5litepod" in kind:
        return _TILE_BYTES_V5E
    return _TILE_BYTES_BIG


def _is_v7() -> bool:
    return "v7" in _chip_kind()


def _identity_sender_impl(x):
    B = x.shape[0]
    n = B * 2
    dtype = x.dtype
    itemsize = jnp.dtype(dtype).itemsize

    if n <= _SMALL_N:
        # --- small-batch fast path: single step, whole (B, 2) array ---
        message = pl.pallas_call(
            _plus_one_kernel,
            out_shape=jax.ShapeDtypeStruct((B, 2), dtype),
            cost_estimate=pl.CostEstimate(
                flops=n, transcendentals=0, bytes_accessed=2 * n * itemsize),
        )(x)
    else:
        # --- lane-dense path for large batches: (rows, 128) repack ---
        sub = _sublane_multiple(dtype)
        rows = pl.cdiv(n, _LANES)
        rows = pl.cdiv(rows, sub) * sub            # dtype-aware sublane alignment
        padded = rows * _LANES

        tile_rows = min(rows, max(sub, _tile_budget_bytes() // (_LANES * itemsize)))
        if _is_v7() and rows >= 2 * sub and tile_rows >= rows:
            # Guarantee >= 2 grid steps so "parallel" shards across both TCs.
            tile_rows = pl.cdiv(pl.cdiv(rows, 2), sub) * sub
        grid = pl.cdiv(rows, tile_rows)            # ragged last block is masked

        x_flat = x.reshape(-1)
        pad_needed = padded != n
        if pad_needed:
            x_flat = jnp.pad(x_flat, (0, padded - n))
        x2d = x_flat.reshape(rows, _LANES)

        spec = pl.BlockSpec((tile_rows, _LANES), lambda i: (i, 0))
        out2d = pl.pallas_call(
            _plus_one_kernel,
            out_shape=jax.ShapeDtypeStruct((rows, _LANES), dtype),
            grid=(grid,),
            in_specs=[spec],
            out_specs=spec,
            compiler_params=pltpu.CompilerParams(
                dimension_semantics=("parallel",)),
            cost_estimate=pl.CostEstimate(
                flops=padded, transcendentals=0,
                bytes_accessed=2 * padded * itemsize),
            # Only alias when the padded buffer is a fresh throwaway temporary
            # (avoids forcing a defensive copy of the caller's input otherwise).
            input_output_aliases={0: 0} if pad_needed else {},
        )(x2d)
        message = out2d.reshape(-1)[:n].reshape(B, 2)

    # zeros never depend on x: XLA constant, not extra kernel output streams.
    # torch returns the same tensor object twice; one aliased array matches.
    zeros = jnp.zeros((B, 2), dtype=jnp.float32)
    return message, zeros, zeros


_identity_sender_jit = jax.jit(_identity_sender_impl)


def identity_sender_forward(x, aux_input=None):
    """Pallas implementation of IdentitySender.forward.

    Args:
      x: jnp array of shape (B, 2) (any numeric dtype, e.g. int32 or float32).
      aux_input: unused (kept for signature parity with the torch module).

    Returns:
      (x + 1, zeros(B, 2) float32, zeros(B, 2) float32)
    """
    assert x.ndim == 2 and x.shape[1] == 2, "message.size(1) must be 2"
    del aux_input
    return _identity_sender_jit(x)


if __name__ == "__main__":
    key = jax.random.PRNGKey(0)
    B = 8
    # Messages in EGG are typically integer symbol ids; use int32 here.
    x = jax.random.randint(key, (B, 2), minval=0, maxval=10, dtype=jnp.int32)

    msg, z0, z1 = identity_sender_forward(x, aux_input=None)
    jax.block_until_ready((msg, z0, z1))

    assert msg.shape == (B, 2) and msg.dtype == x.dtype
    assert jnp.array_equal(msg, x + 1)
    assert z0.shape == (B, 2) and z0.dtype == jnp.float32 and not jnp.any(z0)
    assert z1.shape == (B, 2) and z1.dtype == jnp.float32 and not jnp.any(z1)

    # Non-aligned float batch (still the small-batch direct path).
    xf = jax.random.normal(jax.random.PRNGKey(1), (5, 2), dtype=jnp.float32)
    mf, zf0, zf1 = identity_sender_forward(xf)
    jax.block_until_ready((mf, zf0, zf1))
    assert jnp.allclose(mf, xf + 1.0)
    assert zf0.shape == (5, 2) and not jnp.any(zf0)

    # Larger batch to exercise the lane-dense tiled path (pad + (rows,128) grid).
    Bl = 40_000
    xl = jax.random.randint(jax.random.PRNGKey(2), (Bl, 2), 0, 10, dtype=jnp.int32)
    ml, zl0, zl1 = identity_sender_forward(xl)
    jax.block_until_ready((ml, zl0, zl1))
    assert ml.shape == (Bl, 2) and jnp.array_equal(ml, xl + 1)
    assert not jnp.any(zl0)

    print("KERNEL_OK")
</pallas_src>

<mosaic_0001>
module attributes {stable_mosaic.version = 11 : i64} {
  func.func @_plus_one_kernel(%arg0: memref<8x2xi32, #tpu.memory_space<vmem>>, %arg1: memref<8x2xi32, #tpu.memory_space<vmem>>) attributes {dimension_semantics = [], scalar_prefetch = 0 : i64, scratch_operands = 0 : i64, tpu.core_type = #tpu.core_type<tc>} {
    %c0 = arith.constant 0 : index
    %c0_0 = arith.constant 0 : index
    %0 = vector.load %arg0[%c0, %c0_0] : memref<8x2xi32, #tpu.memory_space<vmem>>, vector<8x2xi32>
    %c1_i32 = arith.constant 1 : i32
    %1 = vector.broadcast %c1_i32 : i32 to vector<8x2xi32>
    %2 = arith.addi %0, %1 : vector<8x2xi32>
    %c0_1 = arith.constant 0 : index
    %c0_2 = arith.constant 0 : index
    %3 = vector.load %arg1[%c0_1, %c0_2] : memref<8x2xi32, #tpu.memory_space<vmem>>, vector<8x2xi32>
    tpu.vector_store %arg1[%c0_1, %c0_2], %2 {strides = array<i32>} : memref<8x2xi32, #tpu.memory_space<vmem>>, vector<8x2xi32>,
    return
  }
}

</mosaic_0001>

<bundles_post_ra>
// kernel: _identity_sender_impl.1
= control target key start
LH: loop header
LB: loop body
LE: loop exit
PB: predicated region body
PF: predicated region fallthrough
CT: control target
= control target key end

     0   :  { %vm10_vm0 = vcmask 15360   ;;  %s32_s0 = inlined_call_operand.vmem [shape: s32[8,2], index: 0, kind: input, shape index: {}]   ;;  %s33_s1 = inlined_call_operand.vmem [shape: s32[8,2], index: 1, kind: output, shape index: {}]  }
   0x1   :  { %v8_v0 = vld [vmem:[%s32_s0] sm:$0xff] }
   0x2   :  { %v9_v1 = vadd.s32 1, %v8_v0 }
   0x4   :  { %11 = vst.msk [vmem:[%s33_s1] sm:$0xff] %vm10_vm0, %v9_v1 }

</bundles_post_ra>
